<compile_context>
chip_gen: v7x
topology: tpu7x:2x2x1
jax: 0.10.0
libtpu: 0.0.40
codegen_flags: <defaults>
</compile_context>

<pallas_src>
import functools

import jax
import jax.numpy as jnp
import numpy as np
from jax.experimental import pallas as pl
from jax.experimental.pallas import tpu as pltpu


def _basic_block_kernel(x_ref, w1_ref, w2_ref, bn_ref, out_ref, *,
                        K, dilation, L, Lp, pad, nb, count, eps):
    """Fused BasicBlock forward on a channel-major, batch-flattened slab.

    x_ref  : (Cin, W0) f32 — per-batch zero-padded segments of width Lp,
             flattened over batch, plus `ext` extra zero margin columns.
    w1_ref : (K, Cout, Cin) conv1 taps.
    w2_ref : (K, Cout, Cin) conv2 taps.
    bn_ref : (C, 4) packed [gamma1, beta1, gamma2, beta2].
    out_ref: (Cout, W2) — valid element (b, l) lives at column b*Lp + l.
    """
    ext = (K - 1) * dilation            # == 2*pad for odd K
    x = x_ref[...]                      # (Cin, W0)
    bn = bn_ref[...]                    # (C, 4)
    W0 = x.shape[1]
    W1 = W0 - ext                       # conv1 output width
    W2 = W1 - ext                       # conv2 output width
    inv_n = 1.0 / count

    def conv(a, w_ref_, width):
        # One (Cout, Cin) @ (Cin, width) MXU dot per tap; batch folded in lanes.
        acc = None
        for k in range(K):              # static unrolled tap loop
            s = k * dilation
            t = jnp.dot(w_ref_[k], a[:, s:s + width],
                        preferred_element_type=jnp.float32)
            acc = t if acc is None else acc + t
        return acc

    def valid_mask(width, lo, hi):
        # 1.0 on columns holding real (batch, position) data, 0.0 on pad/border
        # columns.  Built from comparisons only (static segment bounds).
        col = jax.lax.broadcasted_iota(jnp.int32, (1, width), 1)
        m = jnp.zeros((1, width), jnp.bool_)
        for b in range(nb):             # static unrolled over batch segments
            seg = jnp.logical_and(col >= b * Lp + lo, col < b * Lp + hi)
            m = jnp.logical_or(m, seg)
        return m.astype(jnp.float32)

    def bn_fold(h, gamma, beta, mask):
        # Training-mode BN folded into one per-channel scale/shift FMA.
        # Statistics are taken over the `count` valid columns only.
        mean = jnp.sum(h * mask, axis=1, keepdims=True) * inv_n
        cen = (h - mean) * mask
        var = jnp.sum(cen * cen, axis=1, keepdims=True) * inv_n
        scale = gamma * jax.lax.rsqrt(var + eps)
        shift = beta - mean * scale
        return h * scale + shift

    # conv1 -> bn1 -> relu ; re-zero border columns so they serve as conv2's
    # zero padding (and stay out of bn2's statistics).
    m1 = valid_mask(W1, pad, pad + L)
    h = conv(x, w1_ref, W1)
    h = jnp.maximum(bn_fold(h, bn[:, 0:1], bn[:, 1:2], m1), 0.0) * m1

    # conv2 -> bn2 -> + identity residual -> relu
    m2 = valid_mask(W2, 0, L)
    h = conv(h, w2_ref, W2)
    h = bn_fold(h, bn[:, 2:3], bn[:, 3:4], m2)
    residual = x[:, ext:ext + W2]       # x element (b, l) sits at col b*Lp+l+ext
    out_ref[...] = jnp.maximum(h + residual, 0.0)


def basic_block(x, params, *, stride=1, dilation=1):
    w1, b1, g1, be1, w2, b2, g2, be2 = params
    # Conv biases are mathematically cancelled by training-mode BN mean
    # subtraction -> dead compute and two dead DMAs; drop them.
    del b1, b2

    B, cin, L = x.shape
    planes, inplanes, K = w1.shape
    assert stride == 1 and cin == inplanes == planes, \
        "identity residual needs downsample=None (stride=1, inplanes==planes)"
    assert K % 2 == 1, "'same' output length requires odd kernel_size"

    pad = dilation * (K - 1) // 2
    ext = (K - 1) * dilation            # == 2*pad
    Lp = L + 2 * pad
    W1 = B * Lp                         # conv1 output width (per-batch padded)
    W0 = W1 + ext                       # kernel input width (extra zero margin)
    W2 = W1 - ext                       # conv2 / kernel output width

    # ---- layout plumbing (XLA side, outside the kernel) ----
    x_t = jnp.transpose(x, (1, 0, 2)).astype(jnp.float32)          # (C, B, L)
    x_p = jnp.pad(x_t, ((0, 0), (0, 0), (pad, pad)))               # (C, B, Lp)
    x_ext = jnp.pad(x_p.reshape(cin, W1), ((0, 0), (pad, pad)))    # (C, W0)

    w1t = jnp.transpose(w1, (2, 0, 1)).astype(jnp.float32)         # (K, Cout, Cin)
    w2t = jnp.transpose(w2, (2, 0, 1)).astype(jnp.float32)         # (K, Cout, Cin)
    bn = jnp.concatenate(
        [g1.reshape(-1, 1), be1.reshape(-1, 1),
         g2.reshape(-1, 1), be2.reshape(-1, 1)], axis=1).astype(jnp.float32)

    vmem = pl.BlockSpec(memory_space=pltpu.MemorySpace.VMEM)
    out2d = pl.pallas_call(
        functools.partial(_basic_block_kernel, K=K, dilation=dilation, L=L,
                          Lp=Lp, pad=pad, nb=B, count=float(B * L), eps=1e-5),
        out_shape=jax.ShapeDtypeStruct((planes, W2), jnp.float32),
        in_specs=[vmem] * 4,
        out_specs=vmem,
    )(x_ext, w1t, w2t, bn)

    # ---- un-flatten: valid element (b, l) lives at column b*Lp + l ----
    out_full = jnp.pad(out2d, ((0, 0), (0, ext)))                  # (C, B*Lp)
    out = out_full.reshape(planes, B, Lp)[:, :, :L]                # (C, B, L)
    return jnp.transpose(out, (1, 0, 2))                           # (B, C, L)


def init_params(key, inplanes, planes, kernel_size):
    k1, k2, k3, k4 = jax.random.split(key, 4)
    lim1 = 1.0 / np.sqrt(inplanes * kernel_size)
    w1 = jax.random.uniform(k1, (planes, inplanes, kernel_size), jnp.float32, -lim1, lim1)
    b1 = jax.random.uniform(k2, (planes, 1), jnp.float32, -lim1, lim1)
    lim2 = 1.0 / np.sqrt(planes * kernel_size)
    w2 = jax.random.uniform(k3, (planes, planes, kernel_size), jnp.float32, -lim2, lim2)
    b2 = jax.random.uniform(k4, (planes, 1), jnp.float32, -lim2, lim2)
    g1 = jnp.ones((planes, 1), jnp.float32)
    be1 = jnp.zeros((planes, 1), jnp.float32)
    g2 = jnp.ones((planes, 1), jnp.float32)
    be2 = jnp.zeros((planes, 1), jnp.float32)
    return (w1, b1, g1, be1, w2, b2, g2, be2)


def _reference(x, params, *, stride=1, dilation=1):
    """Pure-JAX reference mirroring the PyTorch forward (training-mode BN,
    conv biases included — exactly cancelled by BN)."""
    w1, b1, g1, be1, w2, b2, g2, be2 = params
    K = w1.shape[-1]
    pad = dilation * (K - 1) // 2
    dn = ('NCH', 'OIH', 'NCH')

    def conv(h, w, b, s):
        o = jax.lax.conv_general_dilated(h, w, window_strides=(s,),
                                         padding=[(pad, pad)],
                                         rhs_dilation=(dilation,),
                                         dimension_numbers=dn)
        return o + b[None, :, :]

    def bn(h, g, be, eps=1e-5):
        m = jnp.mean(h, axis=(0, 2), keepdims=True)
        v = jnp.mean((h - m) ** 2, axis=(0, 2), keepdims=True)
        return g[None, :, :] * (h - m) / jnp.sqrt(v + eps) + be[None, :, :]

    out = jax.nn.relu(bn(conv(x, w1, b1, stride), g1, be1))
    out = bn(conv(out, w2, b2, 1), g2, be2)
    return jax.nn.relu(out + x)


if __name__ == "__main__":
    key = jax.random.PRNGKey(0)
    kx, kp = jax.random.split(key)

    B, C, L = 2, 4, 16           # batch, channels (inplanes == planes), length
    kernel_size = 3
    x = jax.random.normal(kx, (B, C, L), jnp.float32)
    params = init_params(kp, inplanes=C, planes=C, kernel_size=kernel_size)

    out = jax.block_until_ready(basic_block(x, params, stride=1, dilation=1))
    ref = jax.block_until_ready(_reference(x, params, stride=1, dilation=1))
    np.testing.assert_allclose(np.asarray(out), np.asarray(ref), rtol=1e-4, atol=1e-4)

    print("KERNEL_OK")
</pallas_src>

<mosaic_0001>
module attributes {stable_mosaic.version = 11 : i64} {
  func.func @_basic_block_kernel(%arg0: memref<4x38xf32, #tpu.memory_space<vmem>>, %arg1: memref<3x4x4xf32, #tpu.memory_space<vmem>>, %arg2: memref<3x4x4xf32, #tpu.memory_space<vmem>>, %arg3: memref<4x4xf32, #tpu.memory_space<vmem>>, %arg4: memref<4x34xf32, #tpu.memory_space<vmem>>) attributes {dimension_semantics = [], scalar_prefetch = 0 : i64, scratch_operands = 0 : i64, tpu.core_type = #tpu.core_type<tc>} {
    %c0 = arith.constant 0 : index
    %c0_0 = arith.constant 0 : index
    %0 = vector.load %arg0[%c0, %c0_0] : memref<4x38xf32, #tpu.memory_space<vmem>>, vector<4x38xf32>
    %c0_1 = arith.constant 0 : index
    %c0_2 = arith.constant 0 : index
    %1 = vector.load %arg3[%c0_1, %c0_2] : memref<4x4xf32, #tpu.memory_space<vmem>>, vector<4x4xf32>
    %2 = tpu.iota {dimensions = array<i32: 1>} : vector<1x36xi32>
    %false = arith.constant false
    %3 = vector.broadcast %false : i1 to vector<1x36xi1>
    %c1_i32 = arith.constant 1 : i32
    %4 = vector.broadcast %c1_i32 : i32 to vector<1x36xi32>
    %5 = arith.cmpi sge, %2, %4 : vector<1x36xi32>
    %c17_i32 = arith.constant 17 : i32
    %6 = vector.broadcast %c17_i32 : i32 to vector<1x36xi32>
    %7 = arith.cmpi slt, %2, %6 : vector<1x36xi32>
    %8 = arith.andi %5, %7 : vector<1x36xi1>
    %9 = arith.ori %3, %8 : vector<1x36xi1>
    %c19_i32 = arith.constant 19 : i32
    %10 = vector.broadcast %c19_i32 : i32 to vector<1x36xi32>
    %11 = arith.cmpi sge, %2, %10 : vector<1x36xi32>
    %c35_i32 = arith.constant 35 : i32
    %12 = vector.broadcast %c35_i32 : i32 to vector<1x36xi32>
    %13 = arith.cmpi slt, %2, %12 : vector<1x36xi32>
    %14 = arith.andi %11, %13 : vector<1x36xi1>
    %15 = arith.ori %9, %14 : vector<1x36xi1>
    %16 = arith.extui %15 : vector<1x36xi1> to vector<1x36xi32>
    %17 = arith.sitofp %16 : vector<1x36xi32> to vector<1x36xf32>
    %c0_3 = arith.constant 0 : index
    %c0_4 = arith.constant 0 : index
    %c0_5 = arith.constant 0 : index
    %18 = vector.load %arg1[%c0_3, %c0_4, %c0_5] : memref<3x4x4xf32, #tpu.memory_space<vmem>>, vector<1x4x4xf32>
    %19 = vector.shape_cast %18 : vector<1x4x4xf32> to vector<4x4xf32>
    %20 = vector.extract_strided_slice %0 {offsets = [0, 0], sizes = [4, 36], strides = [1, 1]} : vector<4x38xf32> to vector<4x36xf32>
    %cst = arith.constant dense<0.000000e+00> : vector<4x36xf32>
    %21 = tpu.matmul %19, %20, %cst {dimension_numbers = #tpu.dot_dimension_numbers<[1], [0], [0], [1], [0, 0, 1, 1], [], []>} : vector<4x4xf32>, vector<4x36xf32>, vector<4x36xf32> -> vector<4x36xf32>
    %c1 = arith.constant 1 : index
    %c0_6 = arith.constant 0 : index
    %c0_7 = arith.constant 0 : index
    %22 = vector.load %arg1[%c1, %c0_6, %c0_7] : memref<3x4x4xf32, #tpu.memory_space<vmem>>, vector<1x4x4xf32>
    %23 = vector.shape_cast %22 : vector<1x4x4xf32> to vector<4x4xf32>
    %24 = vector.extract_strided_slice %0 {offsets = [0, 1], sizes = [4, 36], strides = [1, 1]} : vector<4x38xf32> to vector<4x36xf32>
    %cst_8 = arith.constant dense<0.000000e+00> : vector<4x36xf32>
    %25 = tpu.matmul %23, %24, %cst_8 {dimension_numbers = #tpu.dot_dimension_numbers<[1], [0], [0], [1], [0, 0, 1, 1], [], []>} : vector<4x4xf32>, vector<4x36xf32>, vector<4x36xf32> -> vector<4x36xf32>
    %26 = arith.addf %21, %25 : vector<4x36xf32>
    %c2 = arith.constant 2 : index
    %c0_9 = arith.constant 0 : index
    %c0_10 = arith.constant 0 : index
    %27 = vector.load %arg1[%c2, %c0_9, %c0_10] : memref<3x4x4xf32, #tpu.memory_space<vmem>>, vector<1x4x4xf32>
    %28 = vector.shape_cast %27 : vector<1x4x4xf32> to vector<4x4xf32>
    %29 = vector.extract_strided_slice %0 {offsets = [0, 2], sizes = [4, 36], strides = [1, 1]} : vector<4x38xf32> to vector<4x36xf32>
    %cst_11 = arith.constant dense<0.000000e+00> : vector<4x36xf32>
    %30 = tpu.matmul %28, %29, %cst_11 {dimension_numbers = #tpu.dot_dimension_numbers<[1], [0], [0], [1], [0, 0, 1, 1], [], []>} : vector<4x4xf32>, vector<4x36xf32>, vector<4x36xf32> -> vector<4x36xf32>
    %31 = arith.addf %26, %30 : vector<4x36xf32>
    %32 = vector.extract_strided_slice %1 {offsets = [0, 0], sizes = [4, 1], strides = [1, 1]} : vector<4x4xf32> to vector<4x1xf32>
    %33 = vector.extract_strided_slice %1 {offsets = [0, 1], sizes = [4, 1], strides = [1, 1]} : vector<4x4xf32> to vector<4x1xf32>
    %34 = vector.broadcast %17 : vector<1x36xf32> to vector<4x36xf32>
    %35 = arith.mulf %31, %34 : vector<4x36xf32>
    %cst_12 = arith.constant dense<0.000000e+00> : vector<4xf32>
    %36 = vector.multi_reduction <add>, %35, %cst_12 [1] : vector<4x36xf32> to vector<4xf32>
    %37 = vector.shape_cast %36 : vector<4xf32> to vector<4x1xf32>
    %cst_13 = arith.constant 3.125000e-02 : f32
    %38 = vector.broadcast %cst_13 : f32 to vector<4x1xf32>
    %39 = arith.mulf %37, %38 : vector<4x1xf32>
    %40 = vector.broadcast %39 : vector<4x1xf32> to vector<4x36xf32>
    %41 = arith.subf %31, %40 : vector<4x36xf32>
    %42 = vector.broadcast %17 : vector<1x36xf32> to vector<4x36xf32>
    %43 = arith.mulf %41, %42 : vector<4x36xf32>
    %44 = arith.mulf %43, %43 : vector<4x36xf32>
    %cst_14 = arith.constant dense<0.000000e+00> : vector<4xf32>
    %45 = vector.multi_reduction <add>, %44, %cst_14 [1] : vector<4x36xf32> to vector<4xf32>
    %46 = vector.shape_cast %45 : vector<4xf32> to vector<4x1xf32>
    %cst_15 = arith.constant 3.125000e-02 : f32
    %47 = vector.broadcast %cst_15 : f32 to vector<4x1xf32>
    %48 = arith.mulf %46, %47 : vector<4x1xf32>
    %cst_16 = arith.constant 9.99999974E-6 : f32
    %49 = vector.broadcast %cst_16 : f32 to vector<4x1xf32>
    %50 = arith.addf %48, %49 : vector<4x1xf32>
    %51 = math.rsqrt %50 : vector<4x1xf32>
    %52 = arith.mulf %32, %51 : vector<4x1xf32>
    %53 = arith.mulf %39, %52 : vector<4x1xf32>
    %54 = arith.subf %33, %53 : vector<4x1xf32>
    %55 = vector.broadcast %52 : vector<4x1xf32> to vector<4x36xf32>
    %56 = arith.mulf %31, %55 : vector<4x36xf32>
    %57 = vector.broadcast %54 : vector<4x1xf32> to vector<4x36xf32>
    %58 = arith.addf %56, %57 : vector<4x36xf32>
    %cst_17 = arith.constant 0.000000e+00 : f32
    %59 = vector.broadcast %cst_17 : f32 to vector<4x36xf32>
    %60 = arith.maximumf %58, %59 : vector<4x36xf32>
    %61 = vector.broadcast %17 : vector<1x36xf32> to vector<4x36xf32>
    %62 = arith.mulf %60, %61 : vector<4x36xf32>
    %63 = tpu.iota {dimensions = array<i32: 1>} : vector<1x34xi32>
    %false_18 = arith.constant false
    %64 = vector.broadcast %false_18 : i1 to vector<1x34xi1>
    %c0_i32 = arith.constant 0 : i32
    %65 = vector.broadcast %c0_i32 : i32 to vector<1x34xi32>
    %66 = arith.cmpi sge, %63, %65 : vector<1x34xi32>
    %c16_i32 = arith.constant 16 : i32
    %67 = vector.broadcast %c16_i32 : i32 to vector<1x34xi32>
    %68 = arith.cmpi slt, %63, %67 : vector<1x34xi32>
    %69 = arith.andi %66, %68 : vector<1x34xi1>
    %70 = arith.ori %64, %69 : vector<1x34xi1>
    %c18_i32 = arith.constant 18 : i32
    %71 = vector.broadcast %c18_i32 : i32 to vector<1x34xi32>
    %72 = arith.cmpi sge, %63, %71 : vector<1x34xi32>
    %c34_i32 = arith.constant 34 : i32
    %73 = vector.broadcast %c34_i32 : i32 to vector<1x34xi32>
    %74 = arith.cmpi slt, %63, %73 : vector<1x34xi32>
    %75 = arith.andi %72, %74 : vector<1x34xi1>
    %76 = arith.ori %70, %75 : vector<1x34xi1>
    %77 = arith.extui %76 : vector<1x34xi1> to vector<1x34xi32>
    %78 = arith.sitofp %77 : vector<1x34xi32> to vector<1x34xf32>
    %c0_19 = arith.constant 0 : index
    %c0_20 = arith.constant 0 : index
    %c0_21 = arith.constant 0 : index
    %79 = vector.load %arg2[%c0_19, %c0_20, %c0_21] : memref<3x4x4xf32, #tpu.memory_space<vmem>>, vector<1x4x4xf32>
    %80 = vector.shape_cast %79 : vector<1x4x4xf32> to vector<4x4xf32>
    %81 = vector.extract_strided_slice %62 {offsets = [0, 0], sizes = [4, 34], strides = [1, 1]} : vector<4x36xf32> to vector<4x34xf32>
    %cst_22 = arith.constant dense<0.000000e+00> : vector<4x34xf32>
    %82 = tpu.matmul %80, %81, %cst_22 {dimension_numbers = #tpu.dot_dimension_numbers<[1], [0], [0], [1], [0, 0, 1, 1], [], []>} : vector<4x4xf32>, vector<4x34xf32>, vector<4x34xf32> -> vector<4x34xf32>
    %c1_23 = arith.constant 1 : index
    %c0_24 = arith.constant 0 : index
    %c0_25 = arith.constant 0 : index
    %83 = vector.load %arg2[%c1_23, %c0_24, %c0_25] : memref<3x4x4xf32, #tpu.memory_space<vmem>>, vector<1x4x4xf32>
    %84 = vector.shape_cast %83 : vector<1x4x4xf32> to vector<4x4xf32>
    %85 = vector.extract_strided_slice %62 {offsets = [0, 1], sizes = [4, 34], strides = [1, 1]} : vector<4x36xf32> to vector<4x34xf32>
    %cst_26 = arith.constant dense<0.000000e+00> : vector<4x34xf32>
    %86 = tpu.matmul %84, %85, %cst_26 {dimension_numbers = #tpu.dot_dimension_numbers<[1], [0], [0], [1], [0, 0, 1, 1], [], []>} : vector<4x4xf32>, vector<4x34xf32>, vector<4x34xf32> -> vector<4x34xf32>
    %87 = arith.addf %82, %86 : vector<4x34xf32>
    %c2_27 = arith.constant 2 : index
    %c0_28 = arith.constant 0 : index
    %c0_29 = arith.constant 0 : index
    %88 = vector.load %arg2[%c2_27, %c0_28, %c0_29] : memref<3x4x4xf32, #tpu.memory_space<vmem>>, vector<1x4x4xf32>
    %89 = vector.shape_cast %88 : vector<1x4x4xf32> to vector<4x4xf32>
    %90 = vector.extract_strided_slice %62 {offsets = [0, 2], sizes = [4, 34], strides = [1, 1]} : vector<4x36xf32> to vector<4x34xf32>
    %cst_30 = arith.constant dense<0.000000e+00> : vector<4x34xf32>
    %91 = tpu.matmul %89, %90, %cst_30 {dimension_numbers = #tpu.dot_dimension_numbers<[1], [0], [0], [1], [0, 0, 1, 1], [], []>} : vector<4x4xf32>, vector<4x34xf32>, vector<4x34xf32> -> vector<4x34xf32>
    %92 = arith.addf %87, %91 : vector<4x34xf32>
    %93 = vector.extract_strided_slice %1 {offsets = [0, 2], sizes = [4, 1], strides = [1, 1]} : vector<4x4xf32> to vector<4x1xf32>
    %94 = vector.extract_strided_slice %1 {offsets = [0, 3], sizes = [4, 1], strides = [1, 1]} : vector<4x4xf32> to vector<4x1xf32>
    %95 = vector.broadcast %78 : vector<1x34xf32> to vector<4x34xf32>
    %96 = arith.mulf %92, %95 : vector<4x34xf32>
    %cst_31 = arith.constant dense<0.000000e+00> : vector<4xf32>
    %97 = vector.multi_reduction <add>, %96, %cst_31 [1] : vector<4x34xf32> to vector<4xf32>
    %98 = vector.shape_cast %97 : vector<4xf32> to vector<4x1xf32>
    %cst_32 = arith.constant 3.125000e-02 : f32
    %99 = vector.broadcast %cst_32 : f32 to vector<4x1xf32>
    %100 = arith.mulf %98, %99 : vector<4x1xf32>
    %101 = vector.broadcast %100 : vector<4x1xf32> to vector<4x34xf32>
    %102 = arith.subf %92, %101 : vector<4x34xf32>
    %103 = vector.broadcast %78 : vector<1x34xf32> to vector<4x34xf32>
    %104 = arith.mulf %102, %103 : vector<4x34xf32>
    %105 = arith.mulf %104, %104 : vector<4x34xf32>
    %cst_33 = arith.constant dense<0.000000e+00> : vector<4xf32>
    %106 = vector.multi_reduction <add>, %105, %cst_33 [1] : vector<4x34xf32> to vector<4xf32>
    %107 = vector.shape_cast %106 : vector<4xf32> to vector<4x1xf32>
    %cst_34 = arith.constant 3.125000e-02 : f32
    %108 = vector.broadcast %cst_34 : f32 to vector<4x1xf32>
    %109 = arith.mulf %107, %108 : vector<4x1xf32>
    %cst_35 = arith.constant 9.99999974E-6 : f32
    %110 = vector.broadcast %cst_35 : f32 to vector<4x1xf32>
    %111 = arith.addf %109, %110 : vector<4x1xf32>
    %112 = math.rsqrt %111 : vector<4x1xf32>
    %113 = arith.mulf %93, %112 : vector<4x1xf32>
    %114 = arith.mulf %100, %113 : vector<4x1xf32>
    %115 = arith.subf %94, %114 : vector<4x1xf32>
    %116 = vector.broadcast %113 : vector<4x1xf32> to vector<4x34xf32>
    %117 = arith.mulf %92, %116 : vector<4x34xf32>
    %118 = vector.broadcast %115 : vector<4x1xf32> to vector<4x34xf32>
    %119 = arith.addf %117, %118 : vector<4x34xf32>
    %120 = vector.extract_strided_slice %0 {offsets = [0, 2], sizes = [4, 34], strides = [1, 1]} : vector<4x38xf32> to vector<4x34xf32>
    %121 = arith.addf %119, %120 : vector<4x34xf32>
    %cst_36 = arith.constant 0.000000e+00 : f32
    %122 = vector.broadcast %cst_36 : f32 to vector<4x34xf32>
    %123 = arith.maximumf %121, %122 : vector<4x34xf32>
    %c0_37 = arith.constant 0 : index
    %c0_38 = arith.constant 0 : index
    %124 = vector.load %arg4[%c0_37, %c0_38] : memref<4x34xf32, #tpu.memory_space<vmem>>, vector<4x34xf32>
    tpu.vector_store %arg4[%c0_37, %c0_38], %123 {strides = array<i32>} : memref<4x34xf32, #tpu.memory_space<vmem>>, vector<4x34xf32>,
    return
  }
}

</mosaic_0001>

<bundles_post_ra>
// kernel: tpu_custom_call.1
= control target key start
LH: loop header
LB: loop body
LE: loop exit
PB: predicated region body
PF: predicated region fallthrough
CT: control target
= control target key end

     0   :  { %9 = vsyncpa [#allocation3], 0  ;;  %s982_s0 = inlined_call_operand.hbm [shape: f32[4,38], index: 0, kind: input, shape index: {}]   ;;  %s983_s1 = inlined_call_operand.hbm [shape: f32[3,4,4], index: 1, kind: input, shape index: {}]   ;;  %s984_s2 = inlined_call_operand.hbm [shape: f32[3,4,4], index: 2, kind: input, shape index: {}]   ;;  %s985_s3 = inlined_call_operand.vmem [shape: f32[4,4], index: 3, kind: input, shape index: {}]   ;;  %s986_s4 = inlined_call_operand.hbm [shape: f32[4,34], index: 4, kind: output, shape index: {}]  }
   0x1   :  { %10 = vsyncpa [#allocation6], 0 }
   0x2   :  { %11 = vsyncpa [#allocation4], 0  ;;  %s825_s15 = smov [#allocation5]   ;;  %s731_s19 = scalar_lea.hbm %s983_s1, 192 }
   0x3   :  { %s27_s16 = sshll.u32 %s825_s15, 4  ;;  %p732_p0 = scmp.ne.s32.totalorder %s983_s1, %s731_s19  ;;  %s28_s16 = int_to_ptr.vmem [resolvable:$true] %s27_s16 }
   0x4   :  { %p735_p1 = scmp.lt.u32.totalorder %s731_s19, %s983_s1 }
   0x6   :  { %p737_p2 = pnand %p735_p1, %p732_p0 }
   0x8   :  { %740 = shalt.err (!%p737_p2)
}
   0x9   :  { %s741_s24 = scalar_lea.vmem %s28_s16, 192  ;;  %p746_p4 = scmp.lt.s32.totalorder %s28_s16, %s28_s16 }
   0xa   :  { %p742_p3 = scmp.ne.s32.totalorder %s28_s16, %s741_s24  ;;  %p747_p5 = scmp.lt.s32.totalorder %s741_s24, %s741_s24 }
   0xc   :  { %p748_p6 = por %p747_p5, %p746_p4 }
   0xe   :  { %p749_p7 = pnand %p748_p6, %p742_p3 }
  0x10   :  { %752 = shalt.err (!%p749_p7)
}
  0x11   :  { %s826_s25 = smov 64   ;;  %s827_s26 = smov 4  }
  0x12   :  { %33 = dma.hbm_to_vmem [thread:$0]  %s983_s1, 192, %s28_s16, [#allocation6], %s826_s25, %s826_s25, %s827_s26  }
  0x13   :  { %s828_s29 = smov [#allocation2]   ;;  %s829_s5 = smov [#allocation7]  }
  0x14   :  { %s18_s30 = sshll.u32 %s828_s29, 4  ;;  %s39_s6 = sshll.u32 %s829_s5, 4  ;;  %s19_s30 = int_to_ptr.vmem [resolvable:$true] %s18_s30  ;;  %s40_s6 = int_to_ptr.vmem [resolvable:$true] %s39_s6 }
  0x15   :  { %s753_s9 = scalar_lea.hbm %s982_s0, 64 }
  0x16   :  { %p754_p8 = scmp.ne.s32.totalorder %s982_s0, %s753_s9  ;;  %p757_p9 = scmp.lt.u32.totalorder %s753_s9, %s982_s0 }
  0x18   :  { %p759_p10 = pnand %p757_p9, %p754_p8 }
  0x1a   :  { %762 = shalt.err (!%p759_p10)
}
  0x1b   :  { %s763_s1 = scalar_lea.vmem %s19_s30, 64  ;;  %p768_p12 = scmp.lt.s32.totalorder %s19_s30, %s19_s30 }
  0x1c   :  { %p764_p11 = scmp.ne.s32.totalorder %s19_s30, %s763_s1  ;;  %p769_p13 = scmp.lt.s32.totalorder %s763_s1, %s763_s1 }
  0x1e   :  { %p770_p0 = por %p769_p13, %p768_p12 }
  0x20   :  { %p771_p1 = pnand %p770_p0, %p764_p11 }
  0x22   :  { %774 = shalt.err (!%p771_p1)
}
  0x23   :  { %21 = dma.hbm_to_vmem [thread:$0]  %s982_s0, 64, %s19_s30, [#allocation3]  }
  0x24   :  { %s775_s18 = scalar_lea.hbm %s984_s2, 192 }
  0x25   :  { %p776_p2 = scmp.ne.s32.totalorder %s984_s2, %s775_s18  ;;  %p779_p3 = scmp.lt.u32.totalorder %s775_s18, %s984_s2 }
  0x27   :  { %p781_p4 = pnand %p779_p3, %p776_p2 }
  0x29   :  { %784 = shalt.err (!%p781_p4)
}
  0x2a   :  { %s785_s23 = scalar_lea.vmem %s40_s6, 192  ;;  %p790_p6 = scmp.lt.s32.totalorder %s40_s6, %s40_s6 }
  0x2b   :  { %p786_p5 = scmp.ne.s32.totalorder %s40_s6, %s785_s23  ;;  %p791_p7 = scmp.lt.s32.totalorder %s785_s23, %s785_s23 }
  0x2d   :  { %p792_p8 = por %p791_p7, %p790_p6 }
  0x2f   :  { %p793_p9 = pnand %p792_p8, %p786_p5 }
  0x31   :  { %796 = shalt.err (!%p793_p9)
}
  0x32   :  { %45 = dma.hbm_to_vmem [thread:$0]  %s984_s2, 192, %s40_s6, [#allocation6], %s826_s25, %s826_s25, %s827_s26  }
  0x33   :  { %819 = dma.done.wait [#allocation3], 64  }
  0x34   :  { %820 = vsyncadd [#allocation3], 4294967232 }
  0x35   :  { %821 = dma.done.wait [#allocation6], 384  }
  0x36   :  { %822 = vsyncadd [#allocation6], 4294966912  ;;  %v830_v0 = vmov 0.0   ;;  %vm831_vm0 = vmmov 0   ;;  %v57_v1 = vld [vmem:[#allocation2] sm:$0xf]  ;;  %v59_v7 = vlaneseq }
  0x37   :  { %669 = vmatprep.subr.mxu0 %v830_v0  ;;  %684 = vmatprep.subr.mxu1 %v830_v0  ;;  %s832_s27 = smov 127   ;;  %s833_s2 = smov 126   ;;  %vm80_vm1 = vcmask 1043456   ;;  %v72_v2 = vld [vmem:[#allocation5 + $0x4] sm:$0xf]  ;;  %vm76_vm2 = vcmask 31744  }
  0x38   :  { %671 = vmatprep.mubr.msk.f32.mxu0 %vm831_vm0, %v830_v0  ;;  %686 = vmatprep.mubr.msk.f32.mxu1 %vm831_vm0, %v830_v0  ;;  %v70_v4 = vld [vmem:[#allocation5] sm:$0xf]  ;;  %v229_v6 = vld [vmem:[#allocation5 + $0x8] sm:$0xf]  ;;  %v930_v8 = vand.u32 127, %v59_v7  ;;  %vm309_vm10 = vcmask 289792  }
  0x39   :  { %74 = vrot.lane.b32.xlu0 %v57_v1, %s832_s27  ;;  %v834_v20 = vmov 0   ;;  %v835_v24 = vmov 1   ;;  %v940_v25 = vld [vmem:[%s985_s3] sm:$0xf]  ;;  %s836_s28 = smov 1   ;;  %v837_v53 = vmov 2  }
  0x3a   :  { %vm61_vm3 = vcmp.ge.s32.totalorder %v930_v8, 1  ;;  %vm62_vm4 = vcmp.lt.s32.totalorder %v930_v8, 17  ;;  %vm64_vm5 = vcmp.ge.s32.totalorder %v930_v8, 19  ;;  %vm65_vm6 = vcmp.lt.s32.totalorder %v930_v8, 35  ;;  %722 = vset.pattern.permute.xlu1 %v834_v20  ;;  %723 = vset.pattern.permute.xlu0 %v835_v24  ;;  %v355_v37 = vld [vmem:[#allocation7 + $0x4] sm:$0xf] }
  0x3b   :  { %vm63_vm7 = vmand %vm61_vm3, %vm62_vm4  ;;  %v353_v39 = vld [vmem:[#allocation7] sm:$0xf]  ;;  %v510_v41 = vld [vmem:[#allocation7 + $0x8] sm:$0xf]  ;;  %vm347_vm11 = vcmp.ge.s32.totalorder %v930_v8, 18  ;;  %vm348_vm12 = vcmp.lt.s32.totalorder %v930_v8, 34 }
  0x3c   :  { %vm66_vm8 = vmand %vm64_vm5, %vm65_vm6  ;;  %vm345_vm13 = vcmp.lt.s32.totalorder %v930_v8, 16  ;;  %vm590_vm3 = vcmask 273408   ;;  %v838_v57 = vmov 3   ;;  %s839_s3 = smov [#allocation8]  }
  0x3d   :  { %230 = vrot.lane.b32.xlu0 %v57_v1, %s833_s2  ;;  %vm67_vm9 = vmor %vm63_vm7, %vm66_vm8  ;;  %s633_s29 = sshll.u32 %s839_s3, 4  ;;  %s634_s29 = int_to_ptr.vmem [resolvable:$true] %s633_s29 }
  0x3e   :  { %v643_v9 = vsel %vm67_vm9, 1.0, %v830_v0  ;;  %vm349_vm14 = vmand %vm347_vm11, %vm348_vm12  ;;  %s797_s30 = scalar_lea.vmem %s634_s29, 64  ;;  %p802_p11 = scmp.lt.s32.totalorder %s634_s29, %s634_s29 }
  0x3f   :  { %vm350_vm15 = vmor %vm345_vm13, %vm349_vm14  ;;  %p798_p10 = scmp.ne.s32.totalorder %s634_s29, %s797_s30  ;;  %p803_p12 = scmp.lt.s32.totalorder %s797_s30, %s797_s30 }
  0x40   :  { %v650_v42 = vsel %vm350_vm15, 1.0, %v830_v0 }
  0x41   :  { %p804_p13 = por %p803_p12, %p802_p11 }
  0x43   :  { %p805_p0 = pnand %p804_p13, %p798_p10 }
  0xab   :  { %v75_v3 = vpop.permute.xlu0 %74 }
  0xac   :  { %670 = vmatpush3.msk.msra.mxu0 %vm80_vm1, %v75_v3 }
  0xad   :  { %672 = vmatmul.mubr.msk.f32.vlgmr.msra.gmra.mrb[0].mxu0 %vm76_vm2, %v72_v2  ;;  %674 = vmatprep.subr.mxu0 %v830_v0 }
  0xae   :  { %675 = vmatpush3.msk.msra.mxu0 %vm80_vm1, %v57_v1  ;;  %676 = vmatprep.mubr.msk.f32.mxu0 %vm831_vm0, %v830_v0 }
  0xaf   :  { %679 = vmatprep.subr.mxu0 %v830_v0  ;;  %v922_v5 = vpop.permute.xlu0 %230 }
  0xb5   :  { %677 = vmatmul.mubr.msk.f32.vlgmr.msra.gmra.mrb[0].mxu0 %vm76_vm2, %v70_v4 }
  0xb6   :  { %680 = vmatpush3.msk.msra.mxu0 %vm80_vm1, %v922_v5  ;;  %681 = vmatprep.mubr.msk.f32.mxu0 %vm831_vm0, %v830_v0 }
  0xbd   :  { %682 = vmatmul.mubr.msk.f32.vlgmr.msra.gmra.mrb[0].mxu0 %vm76_vm2, %v229_v6 }
 0x190   :  { %v303_v10 = vpop.f32.mrb[0].mxu0 }
 0x191   :  { %v683_v11 = vpop.f32.mrb[1].mxu0  ;;  %v308_v12 = vmul.f32 %v643_v9, %v303_v10 }
 0x193   :  { %v310_v13 = vsel %vm309_vm10, %v308_v12, 0.0 }
 0x194   :  { %311 = vadd.xlane.f32.xlu1 %v310_v13 }
 0x221   :  { %v312_v14 = vpop.xlane.xlu1 %311 }
 0x222   :  { %v313_v15 = vmul.f32 0.03125, %v312_v14 }
 0x224   :  { %v314_v16 = vsub.f32 %v303_v10, %v313_v15 }
 0x226   :  { %v315_v17 = vmul.f32 %v643_v9, %v314_v16 }
 0x228   :  { %v316_v18 = vmul.f32 %v315_v17, %v315_v17 }
 0x22a   :  { %v317_v19 = vsel %vm309_vm10, %v316_v18, 0.0 }
 0x22b   :  { %318 = vadd.xlane.f32.xlu1 %v317_v19 }
 0x2b8   :  { %v319_v21 = vpop.xlane.xlu1 %318 }
 0x2b9   :  { %v320_v22 = vmul.f32 0.03125, %v319_v21 }
 0x2bb   :  { %v321_v23 = vadd.f32 1e-05, %v320_v22 }
 0x2bd   :  { %727 = vrsqrt.f32 %v321_v23 }
 0x2c7   :  { %v728_v26 = vpop.eup %727 }
 0x2c8   :  { %v323_v27 = vmul.f32 %v728_v26, %v940_v25 }
 0x2ca   :  { %332 = vperm.xlu1 %722, %v323_v27   ;;  %v324_v28 = vmul.f32 %v323_v27, %v313_v15 }
 0x2cc   :  { %326 = vrot.lane.b32.xlu0 %v324_v28, %s836_s28 }
 0x2ce   :  { %724 = vset.pattern.permute.xlu1 %v837_v53 }
 0x33e   :  { %v327_v29 = vpop.permute.xlu0 %326 }
 0x33f   :  { %v329_v30 = vsub.f32 %v940_v25, %v327_v29 }
 0x341   :  { %338 = vperm.xlu0 %723, %v329_v30  }
 0x345   :  { %726 = vset.pattern.permute.xlu0 %v838_v57 }
 0x349   :  { %v333_v31 = vpop.permute.xlu1 %332 }
 0x34a   :  { %v335_v32 = vmul.f32 %v333_v31, %v303_v10 }
 0x3c0   :  { %v339_v33 = vpop.permute.xlu0 %338 }
 0x3c1   :  { %v341_v34 = vadd.f32 %v339_v33, %v335_v32 }
 0x3c3   :  { %v342_v35 = vmax.f32 %v341_v34, 0.0 }
 0x3c5   :  { %v343_v36 = vmul.f32 %v643_v9, %v342_v35 }
 0x3c7   :  { %357 = vrot.lane.b32.xlu0 %v343_v36, %s832_s27 }
 0x3cb   :  { %511 = vrot.lane.b32.xlu0 %v343_v36, %s833_s2 }
 0x439   :  { %v358_v38 = vpop.permute.xlu0 %357 }
 0x43a   :  { %685 = vmatpush3.msk.msra.mxu1 %vm80_vm1, %v358_v38 }
 0x43b   :  { %687 = vmatmul.mubr.msk.f32.vlgmr.msra.gmra.mrb[0].mxu1 %vm76_vm2, %v355_v37  ;;  %689 = vmatprep.subr.mxu1 %v830_v0 }
 0x43c   :  { %690 = vmatpush3.msk.msra.mxu1 %vm80_vm1, %v343_v36  ;;  %691 = vmatprep.mubr.msk.f32.mxu1 %vm831_vm0, %v830_v0 }
 0x43d   :  { %694 = vmatprep.subr.mxu1 %v830_v0  ;;  %v512_v40 = vpop.permute.xlu0 %511 }
 0x443   :  { %692 = vmatmul.mubr.msk.f32.vlgmr.msra.gmra.mrb[0].mxu1 %vm76_vm2, %v353_v39 }
 0x444   :  { %695 = vmatpush3.msk.msra.mxu1 %vm80_vm1, %v512_v40  ;;  %696 = vmatprep.mubr.msk.f32.mxu1 %vm831_vm0, %v830_v0 }
 0x44b   :  { %697 = vmatmul.mubr.msk.f32.vlgmr.msra.gmra.mrb[0].mxu1 %vm76_vm2, %v510_v41 }
 0x51e   :  { %v584_v43 = vpop.f32.mrb[0].mxu1 }
 0x51f   :  { %v698_v44 = vpop.f32.mrb[1].mxu1  ;;  %v589_v45 = vmul.f32 %v650_v42, %v584_v43 }
 0x521   :  { %v591_v46 = vsel %vm590_vm3, %v589_v45, 0.0 }
 0x522   :  { %592 = vadd.xlane.f32.xlu1 %v591_v46 }
 0x5af   :  { %v593_v47 = vpop.xlane.xlu1 %592 }
 0x5b0   :  { %v594_v48 = vmul.f32 0.03125, %v593_v47 }
 0x5b2   :  { %v595_v49 = vsub.f32 %v584_v43, %v594_v48 }
 0x5b4   :  { %v596_v50 = vmul.f32 %v650_v42, %v595_v49 }
 0x5b6   :  { %v597_v51 = vmul.f32 %v596_v50, %v596_v50 }
 0x5b8   :  { %v598_v52 = vsel %vm590_vm3, %v597_v51, 0.0 }
 0x5b9   :  { %599 = vadd.xlane.f32.xlu0 %v598_v52 }
 0x646   :  { %v600_v54 = vpop.xlane.xlu0 %599 }
 0x647   :  { %v601_v55 = vmul.f32 0.03125, %v600_v54 }
 0x649   :  { %v602_v56 = vadd.f32 1e-05, %v601_v55 }
 0x64b   :  { %729 = vrsqrt.f32 %v602_v56 }
 0x655   :  { %v730_v58 = vpop.eup %729 }
 0x656   :  { %v604_v59 = vmul.f32 %v730_v58, %v940_v25 }
 0x658   :  { %613 = vperm.xlu1 %724, %v604_v59   ;;  %v605_v60 = vmul.f32 %v604_v59, %v594_v48 }
 0x65a   :  { %607 = vrot.lane.b32.xlu0 %v605_v60, %s836_s28 }
 0x65c   :  { %725 = vset.pattern.permute.xlu1 %v838_v57 }
 0x6cc   :  { %v608_v61 = vpop.permute.xlu0 %607 }
 0x6cd   :  { %v610_v62 = vsub.f32 %v940_v25, %v608_v61 }
 0x6cf   :  { %619 = vperm.xlu1 %725, %v610_v62  }
 0x6d7   :  { %v614_v63 = vpop.permute.xlu1 %613 }
 0x6d8   :  { %v616_v0 = vmul.f32 %v614_v63, %v584_v43 }
 0x74e   :  { %v620_v1 = vpop.permute.xlu1 %619 }
 0x74f   :  { %v622_v2 = vadd.f32 %v620_v1, %v616_v0 }
 0x751   :  { %v624_v3 = vadd.f32 %v622_v2, %v922_v5 }
 0x753   :  { %v625_v4 = vmax.f32 %v624_v3, 0.0 }
 0x755   :  { %626 = vst.msk [vmem:[#allocation8] sm:$0xf] %vm590_vm3, %v625_v4 }
 0x756   :  { %808 = shalt.err (!%p805_p0)
}
 0x757   :  { %s809_s7 = scalar_lea.hbm %s986_s4, 64 }
 0x758   :  { %p810_p1 = scmp.ne.s32.totalorder %s986_s4, %s809_s7  ;;  %p813_p2 = scmp.lt.u32.totalorder %s809_s7, %s986_s4 }
 0x75a   :  { %p815_p3 = pnand %p813_p2, %p810_p1 }
 0x75c   :  { %818 = shalt.err (!%p815_p3)
}
 0x75d   :  { %636 = dma.vmem_to_hbm [thread:$0]  %s634_s29, 64, %s986_s4, [#allocation4]  }
 0x75e   :  { %823 = dma.done.wait [#allocation4], 64  }
 0x75f   :  { %824 = vsyncadd [#allocation4], 4294967232 }
 0x760   :  { %640 = vsyncpa [#allocation3], 1 }
 0x761   :  { %641 = vsyncpa [#allocation6], 1 }
 0x762   :  { %642 = vsyncpa [#allocation4], 1 }

</bundles_post_ra>
